<compile_context>
chip_gen: v6e
topology: v6e:2x2x1
jax: 0.10.0
libtpu: 0.0.40
codegen_flags: <defaults>
</compile_context>

<pallas_src>
import functools
import math

import jax
import jax.numpy as jnp
from jax import lax
from jax.experimental import pallas as pl
from jax.experimental.pallas import tpu as pltpu


def _round_up(x, m):
    return ((x + m - 1) // m) * m


def _predict_id_kernel(x_ref, w1_ref, b1_ref, ln_c_ref, w2_ref, b2_ref,
                       w3_ref, b3_ref, o_ref, *, hidden_true, eps, compute_dtype):
    x = x_ref[...]                                           # [T, K] f32

    # ---- linear1 (MXU, f32 accumulate) ----
    h1 = jnp.dot(x.astype(compute_dtype), w1_ref[...],
                 preferred_element_type=jnp.float32) + b1_ref[...]

    # ---- LayerNorm: center only; torch.std => unbiased (N-1) variance ----
    hp = h1.shape[-1]                                        # padded hidden dim
    # Padded lanes of h1 are exactly zero (w1 pad cols / b1 pad entries are 0),
    # so a plain sum already equals the sum over the true features.
    mean = jnp.sum(h1, axis=-1, keepdims=True) * (1.0 / hidden_true)
    diff = h1 - mean
    sq = diff * diff
    if hp != hidden_true:
        lane = lax.broadcasted_iota(jnp.int32, (1, hp), 1)
        mask = (lane < hidden_true).astype(jnp.float32)
        sq = sq * mask                                       # exclude pad lanes
    var = jnp.sum(sq, axis=-1, keepdims=True) * (1.0 / (hidden_true - 1))
    std = jnp.sqrt(var)
    rstd = pl.reciprocal(std + eps, approx=True)             # EUP slot, ~free
    hn = diff * rstd + ln_c_ref[...]

    # ---- relu -> linear2 -> relu ----
    h = jnp.maximum(hn, 0.0)
    if hp != hidden_true:
        h = h * mask              # keep pad lanes clean (w2 pad rows are zero too)
    h2 = jnp.dot(h.astype(compute_dtype), w2_ref[...],
                 preferred_element_type=jnp.float32) + b2_ref[...]
    h2 = jnp.maximum(h2, 0.0)

    # ---- last_fc ----
    o_ref[...] = (jnp.dot(h2.astype(compute_dtype), w3_ref[...],
                          preferred_element_type=jnp.float32)
                  + b3_ref[...]).astype(o_ref.dtype)


def predict_id_forward(x, params, *, tile_b=256, compute_dtype=jnp.bfloat16):
    """x: [B, num_inputs] float32.  params: dict from init_params (f32)."""
    x = jnp.asarray(x, jnp.float32)
    B, num_inputs = x.shape
    hidden = params["w1"].shape[1]
    num_outputs = params["w3"].shape[1]

    # ---- lane-dense feature padding (multiples of 128) ----
    Hp = _round_up(hidden, 128)
    Np = _round_up(num_outputs, 128)
    ph, po = Hp - hidden, Np - num_outputs

    w1 = jnp.pad(params["w1"], ((0, 0), (0, ph))).astype(compute_dtype)
    b1 = jnp.pad(params["b1"].reshape(1, -1), ((0, 0), (0, ph)))
    ln_c = jnp.pad(params["ln_c"].reshape(1, -1), ((0, 0), (0, ph)))
    w2 = jnp.pad(params["w2"], ((0, ph), (0, ph))).astype(compute_dtype)
    b2 = jnp.pad(params["b2"].reshape(1, -1), ((0, 0), (0, ph)))
    w3 = jnp.pad(params["w3"], ((0, ph), (0, po))).astype(compute_dtype)
    b3 = jnp.pad(params["b3"].reshape(1, -1), ((0, 0), (0, po)))

    # ---- batch tiling: big tiles, but keep >=2 grid steps when possible ----
    B8 = _round_up(B, 8)
    tile = max(8, min(_round_up(tile_b, 8), B8))
    if tile >= B8 and B8 >= 16:          # whole batch in one tile -> split for 2 TCs
        tile = _round_up(pl.cdiv(B8, 2), 8)
    Bp = _round_up(B8, tile)
    if Bp != B:
        x = jnp.pad(x, ((0, Bp - B), (0, 0)))
    grid = (Bp // tile,)

    # ---- VMEM budget (BlockSpec double-buffers everything) ----
    w_itemsize = jnp.dtype(compute_dtype).itemsize
    weight_bytes = (w1.size + w2.size + w3.size) * w_itemsize
    bias_bytes = (b1.size + ln_c.size + b2.size + b3.size) * 4
    act_bytes = (tile * num_inputs + tile * Np) * 4          # x tile + out tile
    interm_bytes = 4 * tile * Hp * 4                         # h1 / diff / h / h2
    vmem_limit = 2 * (weight_bytes + bias_bytes + act_bytes) + interm_bytes + (4 << 20)
    vmem_limit = int(min(max(vmem_limit, 32 << 20), 64 << 20))

    kernel = functools.partial(_predict_id_kernel, hidden_true=hidden,
                               eps=1e-6, compute_dtype=compute_dtype)
    full = lambda shape: pl.BlockSpec(shape, lambda i: (0, 0))

    out = pl.pallas_call(
        kernel,
        out_shape=jax.ShapeDtypeStruct((Bp, Np), jnp.float32),
        grid=grid,
        in_specs=[
            pl.BlockSpec((tile, num_inputs), lambda i: (i, 0)),   # x
            full((num_inputs, Hp)),                               # w1
            full((1, Hp)),                                        # b1
            full((1, Hp)),                                        # ln center
            full((Hp, Hp)),                                       # w2
            full((1, Hp)),                                        # b2
            full((Hp, Np)),                                       # w3
            full((1, Np)),                                        # b3
        ],
        out_specs=pl.BlockSpec((tile, Np), lambda i: (i, 0)),
        compiler_params=pltpu.CompilerParams(
            dimension_semantics=("parallel",),
            vmem_limit_bytes=vmem_limit),
    )(x, w1, b1, ln_c, w2, b2, w3, b3)

    return out[:B, :num_outputs]


def _xavier_uniform(key, fan_in, fan_out, gain=1.0):
    # matches torch.nn.init.xavier_uniform_ (gain * sqrt(6/(fan_in+fan_out)))
    limit = gain * math.sqrt(6.0 / (fan_in + fan_out))
    return jax.random.uniform(key, (fan_in, fan_out), jnp.float32,
                              minval=-limit, maxval=limit)


def init_params(key, num_inputs, hidden_dim, num_outputs):
    k1, k2, k3 = jax.random.split(key, 3)
    return {
        "w1": _xavier_uniform(k1, num_inputs, hidden_dim),
        "b1": jnp.zeros((1, hidden_dim), jnp.float32),
        "ln_c": jnp.zeros((1, hidden_dim), jnp.float32),   # LayerNorm center_param
        "w2": _xavier_uniform(k2, hidden_dim, hidden_dim),
        "b2": jnp.zeros((1, hidden_dim), jnp.float32),
        "w3": _xavier_uniform(k3, hidden_dim, num_outputs),
        "b3": jnp.zeros((1, num_outputs), jnp.float32),
    }


def _reference_forward(x, p):
    eps = 1e-6
    h1 = x @ p["w1"] + p["b1"]
    mean = h1.mean(-1, keepdims=True)
    std = jnp.sqrt(((h1 - mean) ** 2).sum(-1, keepdims=True) / (h1.shape[-1] - 1))
    hn = (h1 - mean) / (std + eps) + p["ln_c"]
    h = jnp.maximum(hn, 0.0)
    h2 = jnp.maximum(h @ p["w2"] + p["b2"], 0.0)
    return h2 @ p["w3"] + p["b3"]


if __name__ == "__main__":
    B, num_inputs, hidden_dim, num_outputs = 64, 32, 64, 16

    key = jax.random.PRNGKey(0)
    kx, kp = jax.random.split(key)
    x = jax.random.normal(kx, (B, num_inputs), jnp.float32)
    params = init_params(kp, num_inputs, hidden_dim, num_outputs)

    ref = _reference_forward(x, params)

    # f32 MXU operands (approx reciprocal / accumulation order are the only deltas)
    out_f32 = jax.block_until_ready(
        predict_id_forward(x, params, tile_b=256, compute_dtype=jnp.float32))
    assert out_f32.shape == (B, num_outputs)
    assert jnp.allclose(out_f32, ref, atol=2e-2, rtol=2e-2), "f32 path mismatch"

    # default bf16 MXU operands (relaxed tolerance vs f32 reference)
    out_bf16 = jax.block_until_ready(predict_id_forward(x, params, tile_b=256))
    assert out_bf16.shape == (B, num_outputs)
    assert jnp.allclose(out_bf16, ref, atol=8e-2, rtol=8e-2), "bf16 path mismatch"

    print("KERNEL_OK")
</pallas_src>

<mosaic_0001>
module attributes {stable_mosaic.version = 11 : i64} {
  func.func @_predict_id_kernel(%arg0: i32, %arg1: memref<32x32xf32, #tpu.memory_space<vmem>>, %arg2: memref<32x128xf32, #tpu.memory_space<vmem>>, %arg3: memref<1x128xf32, #tpu.memory_space<vmem>>, %arg4: memref<1x128xf32, #tpu.memory_space<vmem>>, %arg5: memref<128x128xf32, #tpu.memory_space<vmem>>, %arg6: memref<1x128xf32, #tpu.memory_space<vmem>>, %arg7: memref<128x128xf32, #tpu.memory_space<vmem>>, %arg8: memref<1x128xf32, #tpu.memory_space<vmem>>, %arg9: memref<32x128xf32, #tpu.memory_space<vmem>>) attributes {dimension_semantics = [#tpu.dimension_semantics<parallel>], iteration_bounds = array<i64: 2>, scalar_prefetch = 0 : i64, scratch_operands = 0 : i64, tpu.core_type = #tpu.core_type<tc>, window_params = [{transform_indices = @transform_0, window_bounds = array<i64: 32, 32>}, {pipeline_mode = #tpu.pipeline_mode<synchronous>, transform_indices = @transform_1, window_bounds = array<i64: 32, 128>}, {pipeline_mode = #tpu.pipeline_mode<synchronous>, transform_indices = @transform_2, window_bounds = array<i64: 1, 128>}, {pipeline_mode = #tpu.pipeline_mode<synchronous>, transform_indices = @transform_3, window_bounds = array<i64: 1, 128>}, {pipeline_mode = #tpu.pipeline_mode<synchronous>, transform_indices = @transform_4, window_bounds = array<i64: 128, 128>}, {pipeline_mode = #tpu.pipeline_mode<synchronous>, transform_indices = @transform_5, window_bounds = array<i64: 1, 128>}, {pipeline_mode = #tpu.pipeline_mode<synchronous>, transform_indices = @transform_6, window_bounds = array<i64: 128, 128>}, {pipeline_mode = #tpu.pipeline_mode<synchronous>, transform_indices = @transform_7, window_bounds = array<i64: 1, 128>}, {transform_indices = @transform_8, window_bounds = array<i64: 32, 128>}]} {
    %c0 = arith.constant 0 : index
    %c0_0 = arith.constant 0 : index
    %0 = vector.load %arg1[%c0, %c0_0] : memref<32x32xf32, #tpu.memory_space<vmem>>, vector<32x32xf32>
    %c0_1 = arith.constant 0 : index
    %c0_2 = arith.constant 0 : index
    %1 = vector.load %arg2[%c0_1, %c0_2] : memref<32x128xf32, #tpu.memory_space<vmem>>, vector<32x128xf32>
    %cst = arith.constant dense<0.000000e+00> : vector<32x128xf32>
    %2 = tpu.matmul %0, %1, %cst {dimension_numbers = #tpu.dot_dimension_numbers<[1], [0], [0], [1], [0, 0, 1, 1], [], []>} : vector<32x32xf32>, vector<32x128xf32>, vector<32x128xf32> -> vector<32x128xf32>
    %c0_3 = arith.constant 0 : index
    %c0_4 = arith.constant 0 : index
    %3 = vector.load %arg3[%c0_3, %c0_4] : memref<1x128xf32, #tpu.memory_space<vmem>>, vector<1x128xf32>
    %4 = vector.broadcast %3 : vector<1x128xf32> to vector<32x128xf32>
    %5 = arith.addf %2, %4 : vector<32x128xf32>
    %cst_5 = arith.constant dense<0.000000e+00> : vector<32xf32>
    %6 = vector.multi_reduction <add>, %5, %cst_5 [1] : vector<32x128xf32> to vector<32xf32>
    %7 = vector.shape_cast %6 : vector<32xf32> to vector<32x1xf32>
    %cst_6 = arith.constant 1.562500e-02 : f32
    %8 = vector.broadcast %cst_6 : f32 to vector<32x1xf32>
    %9 = arith.mulf %7, %8 : vector<32x1xf32>
    %10 = vector.broadcast %9 : vector<32x1xf32> to vector<32x128xf32>
    %11 = arith.subf %5, %10 : vector<32x128xf32>
    %12 = arith.mulf %11, %11 : vector<32x128xf32>
    %13 = tpu.iota {dimensions = array<i32: 1>} : vector<1x128xi32>
    %c64_i32 = arith.constant 64 : i32
    %14 = vector.broadcast %c64_i32 : i32 to vector<1x128xi32>
    %15 = arith.cmpi slt, %13, %14 : vector<1x128xi32>
    %16 = arith.extui %15 : vector<1x128xi1> to vector<1x128xi32>
    %17 = arith.sitofp %16 : vector<1x128xi32> to vector<1x128xf32>
    %18 = vector.broadcast %17 : vector<1x128xf32> to vector<32x128xf32>
    %19 = arith.mulf %12, %18 : vector<32x128xf32>
    %cst_7 = arith.constant dense<0.000000e+00> : vector<32xf32>
    %20 = vector.multi_reduction <add>, %19, %cst_7 [1] : vector<32x128xf32> to vector<32xf32>
    %21 = vector.shape_cast %20 : vector<32xf32> to vector<32x1xf32>
    %cst_8 = arith.constant 0.0158730168 : f32
    %22 = vector.broadcast %cst_8 : f32 to vector<32x1xf32>
    %23 = arith.mulf %21, %22 : vector<32x1xf32>
    %24 = math.sqrt %23 : vector<32x1xf32>
    %cst_9 = arith.constant 9.99999997E-7 : f32
    %25 = vector.broadcast %cst_9 : f32 to vector<32x1xf32>
    %26 = arith.addf %24, %25 : vector<32x1xf32>
    %27 = tpu.reciprocal %26 {approx = true} : vector<32x1xf32> -> vector<32x1xf32>
    %28 = vector.broadcast %27 : vector<32x1xf32> to vector<32x128xf32>
    %29 = arith.mulf %11, %28 : vector<32x128xf32>
    %c0_10 = arith.constant 0 : index
    %c0_11 = arith.constant 0 : index
    %30 = vector.load %arg4[%c0_10, %c0_11] : memref<1x128xf32, #tpu.memory_space<vmem>>, vector<1x128xf32>
    %31 = vector.broadcast %30 : vector<1x128xf32> to vector<32x128xf32>
    %32 = arith.addf %29, %31 : vector<32x128xf32>
    %cst_12 = arith.constant 0.000000e+00 : f32
    %33 = vector.broadcast %cst_12 : f32 to vector<32x128xf32>
    %34 = arith.maximumf %32, %33 : vector<32x128xf32>
    %35 = vector.broadcast %17 : vector<1x128xf32> to vector<32x128xf32>
    %36 = arith.mulf %34, %35 : vector<32x128xf32>
    %c0_13 = arith.constant 0 : index
    %c0_14 = arith.constant 0 : index
    %37 = vector.load %arg5[%c0_13, %c0_14] : memref<128x128xf32, #tpu.memory_space<vmem>>, vector<128x128xf32>
    %cst_15 = arith.constant dense<0.000000e+00> : vector<32x128xf32>
    %38 = tpu.matmul %36, %37, %cst_15 {dimension_numbers = #tpu.dot_dimension_numbers<[1], [0], [0], [1], [0, 0, 1, 1], [], []>} : vector<32x128xf32>, vector<128x128xf32>, vector<32x128xf32> -> vector<32x128xf32>
    %c0_16 = arith.constant 0 : index
    %c0_17 = arith.constant 0 : index
    %39 = vector.load %arg6[%c0_16, %c0_17] : memref<1x128xf32, #tpu.memory_space<vmem>>, vector<1x128xf32>
    %40 = vector.broadcast %39 : vector<1x128xf32> to vector<32x128xf32>
    %41 = arith.addf %38, %40 : vector<32x128xf32>
    %cst_18 = arith.constant 0.000000e+00 : f32
    %42 = vector.broadcast %cst_18 : f32 to vector<32x128xf32>
    %43 = arith.maximumf %41, %42 : vector<32x128xf32>
    %c0_19 = arith.constant 0 : index
    %c0_20 = arith.constant 0 : index
    %44 = vector.load %arg7[%c0_19, %c0_20] : memref<128x128xf32, #tpu.memory_space<vmem>>, vector<128x128xf32>
    %cst_21 = arith.constant dense<0.000000e+00> : vector<32x128xf32>
    %45 = tpu.matmul %43, %44, %cst_21 {dimension_numbers = #tpu.dot_dimension_numbers<[1], [0], [0], [1], [0, 0, 1, 1], [], []>} : vector<32x128xf32>, vector<128x128xf32>, vector<32x128xf32> -> vector<32x128xf32>
    %c0_22 = arith.constant 0 : index
    %c0_23 = arith.constant 0 : index
    %46 = vector.load %arg8[%c0_22, %c0_23] : memref<1x128xf32, #tpu.memory_space<vmem>>, vector<1x128xf32>
    %47 = vector.broadcast %46 : vector<1x128xf32> to vector<32x128xf32>
    %48 = arith.addf %45, %47 : vector<32x128xf32>
    %c0_24 = arith.constant 0 : index
    %c0_25 = arith.constant 0 : index
    %49 = vector.load %arg9[%c0_24, %c0_25] : memref<32x128xf32, #tpu.memory_space<vmem>>, vector<32x128xf32>
    tpu.vector_store %arg9[%c0_24, %c0_25], %48 {strides = array<i32>} : memref<32x128xf32, #tpu.memory_space<vmem>>, vector<32x128xf32>,
    return
  }
  func.func @transform_0(%arg0: i32) -> (i32, i32) {
    %c0_i32 = arith.constant 0 : i32
    %c0_i32_0 = arith.constant 0 : i32
    return %arg0, %c0_i32 : i32, i32
  }
  func.func @transform_1(%arg0: i32) -> (i32, i32) {
    %c0_i32 = arith.constant 0 : i32
    %c0_i32_0 = arith.constant 0 : i32
    %c0_i32_1 = arith.constant 0 : i32
    return %c0_i32, %c0_i32_0 : i32, i32
  }
  func.func @transform_2(%arg0: i32) -> (i32, i32) {
    %c0_i32 = arith.constant 0 : i32
    %c0_i32_0 = arith.constant 0 : i32
    %c0_i32_1 = arith.constant 0 : i32
    return %c0_i32, %c0_i32_0 : i32, i32
  }
  func.func @transform_3(%arg0: i32) -> (i32, i32) {
    %c0_i32 = arith.constant 0 : i32
    %c0_i32_0 = arith.constant 0 : i32
    %c0_i32_1 = arith.constant 0 : i32
    return %c0_i32, %c0_i32_0 : i32, i32
  }
  func.func @transform_4(%arg0: i32) -> (i32, i32) {
    %c0_i32 = arith.constant 0 : i32
    %c0_i32_0 = arith.constant 0 : i32
    %c0_i32_1 = arith.constant 0 : i32
    return %c0_i32, %c0_i32_0 : i32, i32
  }
  func.func @transform_5(%arg0: i32) -> (i32, i32) {
    %c0_i32 = arith.constant 0 : i32
    %c0_i32_0 = arith.constant 0 : i32
    %c0_i32_1 = arith.constant 0 : i32
    return %c0_i32, %c0_i32_0 : i32, i32
  }
  func.func @transform_6(%arg0: i32) -> (i32, i32) {
    %c0_i32 = arith.constant 0 : i32
    %c0_i32_0 = arith.constant 0 : i32
    %c0_i32_1 = arith.constant 0 : i32
    return %c0_i32, %c0_i32_0 : i32, i32
  }
  func.func @transform_7(%arg0: i32) -> (i32, i32) {
    %c0_i32 = arith.constant 0 : i32
    %c0_i32_0 = arith.constant 0 : i32
    %c0_i32_1 = arith.constant 0 : i32
    return %c0_i32, %c0_i32_0 : i32, i32
  }
  func.func @transform_8(%arg0: i32) -> (i32, i32) {
    %c0_i32 = arith.constant 0 : i32
    %c0_i32_0 = arith.constant 0 : i32
    return %arg0, %c0_i32 : i32, i32
  }
}

</mosaic_0001>

<bundles_post_ra>
// kernel: tpu_custom_call.1
= control target key start
LH: loop header
LB: loop body
LE: loop exit
PB: predicated region body
PF: predicated region fallthrough
CT: control target
= control target key end

     0   :  { %13 = vsyncpa [#allocation3], 0  ;;  %s1492_s0 = inlined_call_operand.vmem [shape: f32[64,32], index: 0, kind: input, shape index: {}]   ;;  %s1493_s1 = inlined_call_operand.vmem [shape: f32[32,128], index: 1, kind: input, shape index: {}]   ;;  %s1494_s2 = inlined_call_operand.vmem [shape: f32[1,128], index: 2, kind: input, shape index: {}]   ;;  %s1495_s3 = inlined_call_operand.vmem [shape: f32[1,128], index: 3, kind: input, shape index: {}]   ;;  %s1496_s4 = inlined_call_operand.hbm [shape: f32[128,128], index: 4, kind: input, shape index: {}]   ;;  %s1497_s5 = inlined_call_operand.vmem [shape: f32[1,128], index: 5, kind: input, shape index: {}]   ;;  %s1498_s6 = inlined_call_operand.hbm [shape: f32[128,128], index: 6, kind: input, shape index: {}]   ;;  %s1499_s7 = inlined_call_operand.vmem [shape: f32[1,128], index: 7, kind: input, shape index: {}]   ;;  %s1500_s8 = inlined_call_operand.hbm [shape: f32[64,128], index: 8, kind: output, shape index: {}]  }
   0x1   :  { %14 = vsyncpa [#allocation6], 0 }
   0x2   :  { %15 = vsyncpa [#allocation4], 0 }
   0x3   :  { %17 = vsyncpa [#allocation4 + $0x1], 0  ;;  %s1292_s27 = smov 0   ;;  %s1294_s28 = smov 0  }
   0x4   :  { %s1296_s29 = smov 0   ;;  %s1298_s30 = smov 0  }
   0x5 LB: > { %s1313_s9 = sadd.s32 4294967295, %s1237_s30   ;;  %s872_s10 = sadd.s32 4294967294, %s1237_s30   ;;  %s1237_s30 = sphi %s1298_s30, %s1514_s30   ;;  %s1233_s29 = sphi %s1296_s29, %s1513_s29   ;;  %s1229_s28 = sphi %s1294_s28, %s1512_s28   ;;  %s1225_s27 = sphi %s1292_s27, %s1511_s27  }
   0x6   : > { %s1317_s11 = sadd.s32 1, %s1237_s30   ;;  %s203_s12 = sadd.s32 1, %s1233_s29 }
   0x7   : > { %s200_s13 = ssub.s32 %s1237_s30, %s1317_s11  ;;  %p213_p0 = scmp.ne.s32.totalorder %s1233_s29, %s1229_s28 }
   0x8   : > { %p201_p1 = scmp.eq.s32.totalorder %s200_s13, 0  ;;  %p214_p2 = scmp.eq.s32.totalorder %s1313_s9, 1 }
   0x9   : > { %p219_p3 = scmp.ne.s32.totalorder %s1229_s28, %s1225_s27  ;;  %p220_p4 = scmp.eq.s32.totalorder %s872_s10, 1 }
   0xa   : > { %s1328_s14 = scalar_select %p201_p1, %s1233_s29, %s203_s12  }
   0xb   : > { %p1330_p5 = por %p214_p2, %p213_p0  ;;  %p1334_p6 = por %p220_p4, %p219_p3 }
   0xc   : > { %p873_p7 = scmp.ge.s32.totalorder %s1237_s30, 1  ;;  %p227_p8 = scmp.lt.s32.totalorder %s1237_s30, 3 }
   0xd   : > { %s1503_s16 = scalar_select %p1334_p6, 1, 0 }
   0xe   : > { %p1501_p9 = scmp.eq.s32.totalorder %s1313_s9, 0  ;;  %p1341_p10 = pnand %p873_p7, %p227_p8 }
   0xf   : > { %s1239_s18 = smov [#allocation2]   ;;  %s1240_s21 = smov [#allocation5]  }
  0x10   : > { %s248_s19 = sshll.u32 %s1239_s18, 4  ;;  %p1046_p11 = pneg %p1341_p10  ;;  %s249_s19 = int_to_ptr.vmem [resolvable:$true] %s248_s19 }
  0x11   : > { %s264_s22 = sshll.u32 %s1240_s21, 4  ;;  %s1128_s23 = scalar_lea.vmem %s249_s19, 2048  ;;  %s265_s22 = int_to_ptr.vmem [resolvable:$true] %s264_s22 }
  0x12   : > { %p1349_p12 = pnand %p1501_p9, %p1046_p11  ;;  %p1129_p0 = scmp.ne.s32.totalorder %s249_s19, %s1128_s23 }
  0x13   : > { %p1136_p3 = scmp.lt.s32.totalorder %s249_s19, %s249_s19  ;;  %p1137_p4 = scmp.lt.s32.totalorder %s1128_s23, %s1128_s23 }
  0x14   : > { %p1119_p13 = pneg %p1349_p12 }
  0x15   : > { %p1138_p7 = por %p1137_p4, %p1136_p3 }
  0x16   : > { %p1131_p1 = pnand %p1129_p0, %p1119_p13 }
  0x18   : > { %p1132_p2 = pneg %p1131_p1 }
  0x1a   : > { %p1139_p8 = pnand %p1138_p7, %p1132_p2 }
  0x1c   : > { %1142 = shalt.err (!%p1139_p8)
}
  0x1d   : > { %s1241_s24 = smov 128   ;;  %s1242_s25 = smov 8  }
  0x1e   : > { %1049 = dma.hbm_to_vmem [thread:$0]  (!%p1349_p12), %s1496_s4, 2048, %s249_s19, [#allocation3], %s1241_s24, %s1241_s24, %s1242_s25  }
  0x1f   : > { %s1154_s12 = scalar_lea.vmem %s265_s22, 2048  ;;  %p1162_p9 = scmp.lt.s32.totalorder %s265_s22, %s265_s22 }
  0x20   : > { %p1155_p11 = scmp.ne.s32.totalorder %s265_s22, %s1154_s12  ;;  %p1163_p6 = scmp.lt.s32.totalorder %s1154_s12, %s1154_s12 }
  0x22   : > { %p1157_p0 = pnand %p1155_p11, %p1119_p13  ;;  %p1164_p3 = por %p1163_p6, %p1162_p9 }
  0x24   : > { %p1158_p1 = pneg %p1157_p0 }
  0x26   : > { %p1165_p2 = pnand %p1164_p3, %p1158_p1 }
  0x28   : > { %1168 = shalt.err (!%p1165_p2)
}
  0x29   : > { %1052 = dma.hbm_to_vmem [thread:$0]  (!%p1349_p12), %s1498_s6, 2048, %s265_s22, [#allocation6], %s1241_s24, %s1241_s24, %s1242_s25  }
  0x2a   : > { %292 = sbr.rel (%p1341_p10) target bundleno = 1004 (0x3ec), region = 52  ;;  %p1506_p4 = scmp.eq.s32.totalorder (!%p1341_p10), %s1313_s9, 0 }
  0x2f   : > { %1212 = dma.done.wait (%p1506_p4), [#allocation3], 2048   ;;  %p1507_p13 = pmov %p1506_p4 }
  0x30   : > { %p1508_p7 = pmov %p1506_p4 }
  0x31   : > { %1214 = vsyncadd (%p1507_p13), [#allocation3], 4294965248 }
  0x32   : > { %1216 = dma.done.wait (%p1508_p7), [#allocation6], 2048   ;;  %p1509_p6 = pmov %p1506_p4 }
  0x33   : > { %s881_s19 = sshll.u32 %s1313_s9, 2  ;;  %vm352_vm0 = vcmask 261120   ;;  %v344_v0 = vld [vmem:[%s1493_s1 + $0x18] sm:$0xff]  ;;  %v343_v1 = vld [vmem:[%s1493_s1 + $0x10] sm:$0xff]  ;;  %v342_v3 = vld [vmem:[%s1493_s1 + $0x8] sm:$0xff]  ;;  %v470_v17 = vlaneseq  ;;  %v1243_v24 = vmov 0.0  }
  0x34   : > { %1218 = vsyncadd (%p1509_p6), [#allocation6], 4294965248  ;;  %p331_p9 = scmp.lt.s32.totalorder %s881_s19, 7  ;;  %946 = vmatprep.subr.mxu0 %v344_v0  ;;  %v341_v4 = vld [vmem:[%s1493_s1] sm:$0xff]  ;;  %v565_v41 = vld [vmem:[#allocation2 + $0x78] sm:$0xff]  ;;  %s327_s24 = sand.u32 1, %s1229_s28  }
  0x35   : > { %947 = vmatpush3.msra.mxu0 %v344_v0  ;;  %v883_v9 = vld [vmem:[%s1494_s2] ss:$0 sm:$0xff]  ;;  %v471_v18 = vand.u32 127, %v470_v17  ;;  %960 = vmatprep.subr.mxu1 %v565_v41  ;;  %v564_v42 = vld [vmem:[#allocation2 + $0x70] sm:$0xff]  ;;  %v563_v43 = vld [vmem:[#allocation2 + $0x68] sm:$0xff]  ;;  %s880_s25 = sshll.u32 %s327_s24, 5 }
  0x36   : > { %s1516_s19 = smov (!%p331_p9, %s881_s19), 7  ;;  %948 = vmatprep.subr.mxu0 %v343_v1  ;;  %961 = vmatpush3.msra.mxu1 %v565_v41  ;;  %v562_v44 = vld [vmem:[#allocation2 + $0x60] sm:$0xff]  ;;  %v561_v45 = vld [vmem:[#allocation2 + $0x58] sm:$0xff]  ;;  %v560_v46 = vld [vmem:[#allocation2 + $0x50] sm:$0xff]  ;;  %s329_s12 = scalar_lea.vmem [#allocation7], %s880_s25 }
  0x37   : > { %s882_s20 = sshll.u32 %s1516_s19, 3  ;;  %949 = vmatpush3.msra.mxu0 %v343_v1  ;;  %vm472_vm1 = vcmp.lt.s32.totalorder %v471_v18, 64  ;;  %962 = vmatprep.subr.mxu1 %v564_v42  ;;  %v559_v47 = vld [vmem:[#allocation2 + $0x48] sm:$0xff]  ;;  %v558_v48 = vld [vmem:[#allocation2 + $0x40] sm:$0xff]  ;;  %v557_v49 = vld [vmem:[#allocation2 + $0x38] sm:$0xff]  ;;  %s788_s13 = sshll.u32 %s329_s12, 4  ;;  %s1445_s13 = int_to_ptr.vmem [resolvable:$true] %s788_s13 }
  0x38   : > { %s334_s22 = scalar_lea.vmem %s1492_s0, %s882_s20  ;;  %950 = vmatprep.subr.mxu0 %v342_v3  ;;  %v1406_v25 = vsel %vm472_vm1, 1.0, %v1243_v24  ;;  %963 = vmatpush3.msra.mxu1 %v564_v42  ;;  %v556_v50 = vld [vmem:[#allocation2 + $0x30] sm:$0xff]  ;;  %v555_v51 = vld [vmem:[#allocation2 + $0x28] sm:$0xff]  ;;  %v554_v52 = vld [vmem:[#allocation2 + $0x20] sm:$0xff]  ;;  %s897_s18 = sshll.u32 %s1313_s9, 9 }
  0x39   : > { %v337_v2 = vld [vmem:[%s334_s22] sm:$0xff]  ;;  %951 = vmatpush3.msra.mxu0 %v342_v3  ;;  %v338_v5 = vld [vmem:[%s334_s22 + $0x8] sm:$0xff]  ;;  %v339_v6 = vld [vmem:[%s334_s22 + $0x10] sm:$0xff]  ;;  %964 = vmatprep.subr.mxu1 %v563_v43  ;;  %s1450_s21 = scalar_lea.hbm %s1500_s8, %s897_s18  ;;  %s1452_s17 = scalar_lea.sflag [#allocation4], %s327_s24 }
  0x3a   : > { %954 = vmatprep.mubr.msk.f32.mxu0 %vm352_vm0, %v337_v2  ;;  %952 = vmatprep.subr.mxu0 %v341_v4  ;;  %v340_v7 = vld [vmem:[%s334_s22 + $0x18] sm:$0xff]  ;;  %v552_v54 = vld [vmem:[#allocation2 + $0x10] sm:$0xff]  ;;  %v551_v55 = vld [vmem:[#allocation2 + $0x8] sm:$0xff]  ;;  %s1169_s22 = scalar_lea.vmem %s1445_s13, 512  ;;  %s1244_s9 = smov [#allocation7]  }
  0x3b   : > { %953 = vmatpush3.msra.mxu0 %v341_v4  ;;  %965 = vmatpush3.msra.mxu1 %v563_v43  ;;  %v553_v53 = vld [vmem:[#allocation2 + $0x18] sm:$0xff]  ;;  %v550_v56 = vld [vmem:[#allocation2] sm:$0xff]  ;;  %v676_v58 = vld [vmem:[#allocation5 + $0x70] sm:$0xff]  ;;  %p1170_p10 = scmp.ne.s32.totalorder %s1445_s13, %s1169_s22  ;;  %s1173_s23 = sshll.u32 %s1244_s9, 4  ;;  %s1174_s23 = int_to_ptr.vmem [resolvable:$false] %s1173_s23 }
  0x3c   : > { %955 = vmatmul.mubr.msk.f32.vlgmr.msra.gmra.mxu0 %vm352_vm0, %v338_v5  ;;  %966 = vmatprep.subr.mxu1 %v562_v44  ;;  %v677_v57 = vld [vmem:[#allocation5 + $0x78] sm:$0xff]  ;;  %v675_v59 = vld [vmem:[#allocation5 + $0x68] sm:$0xff]  ;;  %v674_v60 = vld [vmem:[#allocation5 + $0x60] sm:$0xff]  ;;  %s1175_s25 = scalar_lea.vmem %s1174_s23, 1024  ;;  %p1176_p11 = scmp.lt.s32.totalorder %s1445_s13, %s1174_s23 }
  0x3d   : > { %957 = vmatprep.mubr.msk.f32.mxu0 %vm352_vm0, %v339_v6  ;;  %967 = vmatpush3.msra.mxu1 %v562_v44  ;;  %v673_v61 = vld [vmem:[#allocation5 + $0x58] sm:$0xff]  ;;  %v672_v62 = vld [vmem:[#allocation5 + $0x50] sm:$0xff]  ;;  %v671_v63 = vld [vmem:[#allocation5 + $0x48] sm:$0xff]  ;;  %p1171_p12 = pnand %p1170_p10, %p1330_p5  ;;  %p1177_p0 = scmp.lt.s32.totalorder %s1175_s25, %s1169_s22 }
  0x3e   : > { %968 = vmatprep.subr.mxu1 %v561_v45  ;;  %998 = vmatprep.subr.mxu0 %v677_v57  ;;  %v670_v0 = vld [vmem:[#allocation5 + $0x40] sm:$0xff]  ;;  %v669_v1 = vld [vmem:[#allocation5 + $0x38] sm:$0xff]  ;;  %v668_v2 = vld [vmem:[#allocation5 + $0x30] sm:$0xff] }
  0x3f   : > { %969 = vmatpush3.msra.mxu1 %v561_v45  ;;  %999 = vmatpush3.msra.mxu0 %v677_v57  ;;  %v667_v3 = vld [vmem:[#allocation5 + $0x28] sm:$0xff]  ;;  %v666_v4 = vld [vmem:[#allocation5 + $0x20] sm:$0xff]  ;;  %p1172_p8 = pneg %p1171_p12  ;;  %p1178_p1 = por %p1177_p0, %p1176_p11 }
  0x40   : > { %958 = vmatmul.mubr.msk.f32.gmra.mxu0 %vm352_vm0, %v340_v7  ;;  %970 = vmatprep.subr.mxu1 %v560_v46  ;;  %v889_v43 = vld [vmem:[%s1495_s3] ss:$0 sm:$0xff] }
  0x41   : > { %971 = vmatpush3.msra.mxu1 %v560_v46  ;;  %1000 = vmatprep.subr.mxu0 %v676_v58  ;;  %p1179_p3 = pnand %p1178_p1, %p1172_p8 }
  0x42   : > { %972 = vmatprep.subr.mxu1 %v559_v47  ;;  %1001 = vmatpush3.msra.mxu0 %v676_v58 }
  0x43   : > { %973 = vmatpush3.msra.mxu1 %v559_v47  ;;  %1002 = vmatprep.subr.mxu0 %v675_v59 }
  0x44   : > { %974 = vmatprep.subr.mxu1 %v558_v48  ;;  %1003 = vmatpush3.msra.mxu0 %v675_v59 }
  0x45   : > { %975 = vmatpush3.msra.mxu1 %v558_v48  ;;  %1004 = vmatprep.subr.mxu0 %v674_v60 }
  0x46   : > { %976 = vmatprep.subr.mxu1 %v557_v49  ;;  %1005 = vmatpush3.msra.mxu0 %v674_v60 }
  0x47   : > { %977 = vmatpush3.msra.mxu1 %v557_v49  ;;  %1006 = vmatprep.subr.mxu0 %v673_v61 }
  0x48   : > { %978 = vmatprep.subr.mxu1 %v556_v50  ;;  %1007 = vmatpush3.msra.mxu0 %v673_v61  ;;  %v664_v61 = vld [vmem:[#allocation5 + $0x10] sm:$0xff] }
  0x49   : > { %979 = vmatpush3.msra.mxu1 %v556_v50  ;;  %1008 = vmatprep.subr.mxu0 %v672_v62 }
  0x4a   : > { %980 = vmatprep.subr.mxu1 %v555_v51  ;;  %1009 = vmatpush3.msra.mxu0 %v672_v62  ;;  %v663_v62 = vld [vmem:[#allocation5 + $0x8] sm:$0xff] }
  0x4b   : > { %981 = vmatpush3.msra.mxu1 %v555_v51  ;;  %1010 = vmatprep.subr.mxu0 %v671_v63 }
  0x4c   : > { %982 = vmatprep.subr.mxu1 %v554_v52  ;;  %1011 = vmatpush3.msra.mxu0 %v671_v63  ;;  %v890_v63 = vld [vmem:[%s1497_s5] ss:$0 sm:$0xff] }
  0x4d   : > { %983 = vmatpush3.msra.mxu1 %v554_v52  ;;  %1012 = vmatprep.subr.mxu0 %v670_v0 }
  0x4e   : > { %984 = vmatprep.subr.mxu1 %v553_v53  ;;  %1013 = vmatpush3.msra.mxu0 %v670_v0 }
  0x4f   : > { %985 = vmatpush3.msra.mxu1 %v553_v53  ;;  %1014 = vmatprep.subr.mxu0 %v669_v1 }
  0x50   : > { %986 = vmatprep.subr.mxu1 %v552_v54  ;;  %1015 = vmatpush3.msra.mxu0 %v669_v1 }
  0x51   : > { %987 = vmatpush3.msra.mxu1 %v552_v54  ;;  %1016 = vmatprep.subr.mxu0 %v668_v2 }
  0x52   : > { %988 = vmatprep.subr.mxu1 %v551_v55  ;;  %1017 = vmatpush3.msra.mxu0 %v668_v2 }
  0x53   : > { %989 = vmatpush3.msra.mxu1 %v551_v55  ;;  %1018 = vmatprep.subr.mxu0 %v667_v3 }
  0x54   : > { %990 = vmatprep.subr.mxu1 %v550_v56  ;;  %1019 = vmatpush3.msra.mxu0 %v667_v3 }
  0x55   : > { %991 = vmatpush3.msra.mxu1 %v550_v56  ;;  %1020 = vmatprep.subr.mxu0 %v666_v4 }
  0x56   : > { %1021 = vmatpush3.msra.mxu0 %v666_v4 }
  0xfc   : > { %v956_v8 = vpop.f32.mrf.mxu0 }
  0xfd   : > { %v437_v14 = vadd.f32 %v956_v8, %v883_v9 }
  0xfe   : > { %v431_v10 = vpop.f32.mrf.mxu0 }
  0xff   : > { %v432_v11 = vadd.f32 %v883_v9, %v431_v10 }
 0x100   : > { %v959_v12 = vpop.f32.mrf.mxu0 }
 0x101   : > { %450 = vadd.xlane.f32.xlu0 %v432_v11  ;;  %v447_v16 = vadd.f32 %v959_v12, %v883_v9 }
 0x102   : > { %v441_v13 = vpop.f32.mrf.mxu0 }
 0x103   : > { %v442_v15 = vadd.f32 %v883_v9, %v441_v13 }
 0x105   : > { %454 = vadd.xlane.f32.xlu1 %v442_v15  ;;  %452 = vadd.xlane.f32.xlu0 %v437_v14 }
 0x109   : > { %456 = vadd.xlane.f32.xlu1 %v447_v16 }
 0x18a   : > { %v451_v19 = vpop.xlane.xlu0 %450 }
 0x18b   : > { %v458_v20 = vmul.f32 0.015625, %v451_v19 }
 0x18d   : > { %v1404_v21 = vsub.f32 %v432_v11, %v458_v20 }
 0x18e   : > { %v455_v22 = vpop.xlane.xlu1 %454  ;;  %v453_v23 = vpop.xlane.xlu0 %452 }
 0x18f   : > { %v460_v26 = vmul.f32 0.015625, %v455_v22  ;;  %v459_v27 = vmul.f32 0.015625, %v453_v23  ;;  %v466_v28 = vmul.f32 %v1404_v21, %v1404_v21 }
 0x191   : > { %v1410_v29 = vsub.f32 %v442_v15, %v460_v26  ;;  %v1412_v30 = vsub.f32 %v437_v14, %v459_v27  ;;  %v475_v31 = vmul.f32 %v1406_v25, %v466_v28 }
 0x192   : > { %v457_v32 = vpop.xlane.xlu1 %456 }
 0x193   : > { %v461_v33 = vmul.f32 0.015625, %v457_v32  ;;  %479 = vadd.xlane.f32.xlu0 %v475_v31  ;;  %v468_v34 = vmul.f32 %v1410_v29, %v1410_v29  ;;  %v467_v35 = vmul.f32 %v1412_v30, %v1412_v30 }
 0x195   : > { %v1419_v36 = vsub.f32 %v447_v16, %v461_v33  ;;  %v477_v37 = vmul.f32 %v1406_v25, %v468_v34  ;;  %v476_v38 = vmul.f32 %v1406_v25, %v467_v35 }
 0x197   : > { %483 = vadd.xlane.f32.xlu0 %v477_v37  ;;  %481 = vadd.xlane.f32.xlu1 %v476_v38  ;;  %v469_v39 = vmul.f32 %v1419_v36, %v1419_v36 }
 0x199   : > { %v478_v40 = vmul.f32 %v1406_v25, %v469_v39 }
 0x19b   : > { %485 = vadd.xlane.f32.xlu1 %v478_v40 }
 0x21c   : > { %v480_v5 = vpop.xlane.xlu0 %479 }
 0x21d   : > { %v487_v6 = vmul.f32 0.015873017, %v480_v5 }
 0x21f   : > { %1101 = vrsqrt.f32 %v487_v6  ;;  %vm493_vm2 = vcmp.eq.f32.partialorder %v487_v6, inf  ;;  %v496_v15 = vand.u32 2147483648, %v487_v6  ;;  %vm495_vm3 = vcmp.eq.f32.partialorder %v487_v6, 0.0 }
 0x220   : > { %v482_v7 = vpop.xlane.xlu1 %481  ;;  %v484_v8 = vpop.xlane.xlu0 %483 }
 0x221   : > { %v488_v9 = vmul.f32 0.015873017, %v482_v7  ;;  %v489_v10 = vmul.f32 0.015873017, %v484_v8 }
 0x223   : > { %1103 = vrsqrt.f32 %v488_v9  ;;  %vm500_vm4 = vcmp.eq.f32.partialorder %v488_v9, inf  ;;  %vm502_vm5 = vcmp.eq.f32.partialorder %v488_v9, 0.0  ;;  %v503_v23 = vand.u32 2147483648, %v488_v9 }
 0x224   : > { %1105 = vrsqrt.f32 %v489_v10  ;;  %v486_v11 = vpop.xlane.xlu1 %485  ;;  %vm507_vm6 = vcmp.eq.f32.partialorder %v489_v10, inf  ;;  %v510_v27 = vand.u32 2147483648, %v489_v10  ;;  %vm509_vm7 = vcmp.eq.f32.partialorder %v489_v10, 0.0 }
 0x225   : > { %v490_v12 = vmul.f32 0.015873017, %v486_v11  ;;  %v891_v11 = vld [vmem:[%s1499_s7] ss:$0 sm:$0xff] }
 0x227   : > { %1107 = vrsqrt.f32 %v490_v12  ;;  %vm514_vm8 = vcmp.eq.f32.partialorder %v490_v12, inf  ;;  %v517_v38 = vand.u32 2147483648, %v490_v12  ;;  %vm516_vm9 = vcmp.eq.f32.partialorder %v490_v12, 0.0 }
 0x22c   : > { %v1102_v13 = vpop.eup %1101 }
 0x22d   : > { %v492_v14 = vmul.f32 %v1102_v13, %v487_v6 }
 0x22f   : > { %v494_v16 = vsel %vm493_vm2, %v487_v6, %v492_v14 }
 0x230   : > { %v1104_v17 = vpop.eup %1103  ;;  %v497_v18 = vsel %vm495_vm3, %v496_v15, %v494_v16 }
 0x231   : > { %v1106_v19 = vpop.eup %1105  ;;  %v499_v20 = vmul.f32 %v1104_v17, %v488_v9  ;;  %v519_v22 = vadd.f32 1e-06, %v497_v18 }
 0x232   : > { %v506_v24 = vmul.f32 %v1106_v19, %v489_v10 }
 0x233   : > { %v501_v26 = vsel %vm500_vm4, %v488_v9, %v499_v20  ;;  %1109 = vrcp.f32 %v519_v22 }
 0x234   : > { %v1108_v28 = vpop.eup %1107  ;;  %v504_v31 = vsel %vm502_vm5, %v503_v23, %v501_v26  ;;  %v508_v32 = vsel %vm507_vm6, %v489_v10, %v506_v24 }
 0x235   : > { %v520_v33 = vadd.f32 1e-06, %v504_v31  ;;  %v511_v34 = vsel %vm509_vm7, %v510_v27, %v508_v32  ;;  %v513_v35 = vmul.f32 %v1108_v28, %v490_v12 }
 0x236   : > { %v521_v37 = vadd.f32 1e-06, %v511_v34 }
 0x237   : > { %1111 = vrcp.f32 %v520_v33  ;;  %v515_v39 = vsel %vm514_vm8, %v490_v12, %v513_v35 }
 0x238   : > { %1113 = vrcp.f32 %v521_v37  ;;  %v518_v40 = vsel %vm516_vm9, %v517_v38, %v515_v39 }
 0x239   : > { %v522_v41 = vadd.f32 1e-06, %v518_v40 }
 0x23b   : > { %1115 = vrcp.f32 %v522_v41 }
 0x240   : > { %v1110_v42 = vpop.eup %1109 }
 0x241   : > { %v527_v44 = vmul.f32 %v1110_v42, %v1404_v21 }
 0x243   : > { %v538_v45 = vadd.f32 %v889_v43, %v527_v44 }
 0x244   : > { %v1112_v46 = vpop.eup %1111 }
 0x245   : > { %v1114_v47 = vpop.eup %1113  ;;  %v542_v48 = vmax.f32 %v538_v45, 0.0  ;;  %v528_v49 = vmul.f32 %v1112_v46, %v1412_v30  ;;  %v665_v30 = vld [vmem:[#allocation5 + $0x18] sm:$0xff] }
 0x246   : > { %v529_v50 = vmul.f32 %v1114_v47, %v1410_v29  ;;  %1022 = vmatprep.subr.mxu0 %v665_v30 }
 0x247   : > { %v546_v51 = vmul.f32 %v1406_v25, %v542_v48  ;;  %v539_v52 = vadd.f32 %v889_v43, %v528_v49  ;;  %1023 = vmatpush3.msra.mxu0 %v665_v30 }
 0x248   : > { %v1116_v53 = vpop.eup %1115  ;;  %v540_v54 = vadd.f32 %v889_v43, %v529_v50  ;;  %1024 = vmatprep.subr.mxu0 %v664_v61 }
 0x249   : > { %992 = vmatprep.mubr.f32.mxu1 %v546_v51  ;;  %v543_v55 = vmax.f32 %v539_v52, 0.0  ;;  %v530_v56 = vmul.f32 %v1116_v53, %v1419_v36  ;;  %1025 = vmatpush3.msra.mxu0 %v664_v61  ;;  %v662_v36 = vld [vmem:[#allocation5] sm:$0xff] }
 0x24a   : > { %v544_v57 = vmax.f32 %v540_v54, 0.0  ;;  %1026 = vmatprep.subr.mxu0 %v663_v62 }
 0x24b   : > { %v547_v21 = vmul.f32 %v1406_v25, %v543_v55  ;;  %v541_v58 = vadd.f32 %v889_v43, %v530_v56  ;;  %1027 = vmatpush3.msra.mxu0 %v663_v62 }
 0x24c   : > { %v548_v59 = vmul.f32 %v1406_v25, %v544_v57  ;;  %1028 = vmatprep.subr.mxu0 %v662_v36 }
 0x24d   : > { %993 = vmatmul.mubr.f32.vlgmr.msra.gmra.mxu1 %v547_v21  ;;  %v545_v60 = vmax.f32 %v541_v58, 0.0  ;;  %1029 = vmatpush3.msra.mxu0 %v662_v36 }
 0x24e   : > { %995 = vmatprep.mubr.f32.mxu1 %v548_v59 }
 0x24f   : > { %v549_v29 = vmul.f32 %v1406_v25, %v545_v60 }
 0x251   : > { %996 = vmatmul.mubr.f32.gmra.mxu1 %v549_v29 }
 0x30d   : > { %v994_v0 = vpop.f32.mrf.mxu1 }
 0x30e   : > { %v645_v25 = vadd.f32 %v994_v0, %v890_v63 }
 0x30f   : > { %v639_v1 = vpop.f32.mrf.mxu1 }
 0x310   : > { %v640_v2 = vadd.f32 %v890_v63, %v639_v1  ;;  %v659_v5 = vmax.f32 %v645_v25, 0.0 }
 0x311   : > { %v997_v3 = vpop.f32.mrf.mxu1 }
 0x312   : > { %v658_v4 = vmax.f32 %v640_v2, 0.0  ;;  %v655_v6 = vadd.f32 %v997_v3, %v890_v63 }
 0x313   : > { %v649_v7 = vpop.f32.mrf.mxu1 }
 0x314   : > { %v650_v8 = vadd.f32 %v890_v63, %v649_v7  ;;  %1030 = vmatprep.mubr.f32.mxu0 %v658_v4  ;;  %v661_v10 = vmax.f32 %v655_v6, 0.0 }
 0x315   : > { %1031 = vmatmul.mubr.f32.vlgmr.msra.gmra.mxu0 %v659_v5 }
 0x316   : > { %v660_v9 = vmax.f32 %v650_v8, 0.0 }
 0x318   : > { %1033 = vmatprep.mubr.f32.mxu0 %v660_v9 }
 0x319   : > { %1034 = vmatmul.mubr.f32.gmra.mxu0 %v661_v10 }
 0x3d5   : > { %v1032_v12 = vpop.f32.mrf.mxu0 }
 0x3d6   : > { %v757_v13 = vadd.f32 %v1032_v12, %v891_v11 }
 0x3d7   : > { %v751_v14 = vpop.f32.mrf.mxu0 }
 0x3d8   : > { %771 = vst [vmem:[%s329_s12 + $0x8] sm:$0xff] %v757_v13  ;;  %v752_v15 = vadd.f32 %v891_v11, %v751_v14 }
 0x3d9   : > { %v1035_v16 = vpop.f32.mrf.mxu0 }
 0x3da   : > { %770 = vst [vmem:[%s329_s12] sm:$0xff] %v752_v15  ;;  %v767_v17 = vadd.f32 %v1035_v16, %v891_v11 }
 0x3db   : > { %v761_v18 = vpop.f32.mrf.mxu0 }
 0x3dc   : > { %773 = vst [vmem:[%s329_s12 + $0x18] sm:$0xff] %v767_v17  ;;  %v762_v19 = vadd.f32 %v891_v11, %v761_v18 }
 0x3de   : > { %772 = vst [vmem:[%s329_s12 + $0x10] sm:$0xff] %v762_v19 }
 0x3df   : > { %1182 = shalt.err (!%p1179_p3)
}
 0x3e0   : > { %s1183_s24 = scalar_lea.hbm %s1450_s21, 512  ;;  %s1187_s12 = scalar_lea.hbm %s1500_s8, 1024 }
 0x3e1   : > { %p1184_p2 = scmp.ne.s32.totalorder %s1450_s21, %s1183_s24  ;;  %p1188_p7 = scmp.lt.s32.totalorder %s1450_s21, %s1500_s8 }
 0x3e2   : > { %p1189_p6 = scmp.lt.s32.totalorder %s1187_s12, %s1183_s24 }
 0x3e3   : > { %p1185_p4 = pnand %p1184_p2, %p1330_p5 }
 0x3e4   : > { %p1190_p9 = por %p1189_p6, %p1188_p7 }
 0x3e5   : > { %p1186_p13 = pneg %p1185_p4 }
 0x3e7   : > { %p1191_p10 = pnand %p1190_p9, %p1186_p13 }
 0x3e9   : > { %1194 = shalt.err (!%p1191_p10)
}
 0x3ea   : > { %s1245_s20 = smov 128   ;;  %s1246_s22 = smov 8  }
 0x3eb   : > { %1044 = dma.vmem_to_hbm [thread:$0]  (%p1330_p5), %s1445_s13, 512, %s1450_s21, %s1452_s17, %s1245_s20, %s1245_s20, %s1246_s22  }
 0x3ec PF: > { %p1061_p12 = scmp.ge.s32.totalorder %s1237_s30, 2  ;;  %s803_s9 = sand.u32 1, %s1225_s27  }
 0x3ed   : > { %p1510_p8 = scmp.ne.s32.totalorder %s1503_s16, 0  ;;  %s804_s23 = scalar_lea.sflag [#allocation4], %s803_s9 }
 0x3ef   : > { %p1054_p11 = pnand %p1061_p12, %p1510_p8 }
 0x3f1   : > { %p1055_p0 = pneg %p1054_p11 }
 0x3f3   : > { %1220 = dma.done.wait (%p1055_p0), %s804_s23, 512  }
 0x3f4   : > { %1222 = vsyncadd (%p1055_p0), %s804_s23, 4294966784  ;;  %p20_p1 = scmp.ge.s32.totalorder %s1317_s11, 4   ;;  %s1511_s27 = smov %s1229_s28 }
 0x3f5   : > { %s1512_s28 = smov %s1233_s29  ;;  %s1513_s29 = smov %s1328_s14 }
 0x3f6   : > { %s1514_s30 = smov %s1317_s11  ;;  %22 = sbr.rel (!%p20_p1) target bundleno = 5 (0x5), region = 96 }
 0x3fb   :  { %809 = vsyncpa [#allocation3], 1 }
 0x3fc   :  { %811 = vsyncpa [#allocation3 + $0x1], 1 }
 0x3fd   :  { %812 = vsyncpa [#allocation6], 1 }
 0x3fe   :  { %813 = vsyncpa [#allocation4], 1 }
 0x3ff   :  { %815 = vsyncpa [#allocation4 + $0x1], 1 }

</bundles_post_ra>
